<compile_context>
chip_gen: v6e
topology: v6e:2x2x1
jax: 0.10.0
libtpu: 0.0.40
codegen_flags: <defaults>
</compile_context>

<pallas_src>
import functools

import jax
import jax.numpy as jnp
from jax import lax
from jax.experimental import pallas as pl
from jax.experimental.pallas import tpu as pltpu

EPS = 1e-5  # F.layer_norm default eps


def _layernorm(t, gamma):
    """F.layer_norm with beta=0; statistics kept in f32."""
    mu = jnp.mean(t, axis=-1, keepdims=True)
    var = jnp.mean((t - mu) ** 2, axis=-1, keepdims=True)
    return (t - mu) * lax.rsqrt(var + EPS) * gamma


def _device_kind():
    try:
        return jax.devices()[0].device_kind.lower()
    except Exception:
        return ""


def _has_bf16_eup(kind):
    """True on generations with a bf16 EUP path / 256-wide MXU (v6e, v7x)."""
    return not any(tag in kind for tag in ("v2", "v3", "v4", "v5"))


def _vmem_limit_bytes():
    """~75% of physical VMEM (~48 MiB on v7x's 64 MiB, ~96 MiB on v5e/v6e)."""
    cap = 64 * 1024 * 1024
    try:
        cap = int(getattr(pltpu.get_tpu_info(), "vmem_capacity_bytes", cap))
    except Exception:
        pass
    return min((cap * 3) // 4, 96 * 1024 * 1024)


def _pick_tile(n, cap):
    """Largest t <= cap with n % t == 0 and (t % 8 == 0 or t == n).

    Mosaic's (8, 128) block rule needs the second-minor block dim to be a
    multiple of 8 unless it spans the full array dimension.
    """
    if n <= cap:
        return n
    for t in range(cap, 7, -1):
        if n % t == 0 and t % 8 == 0:
            return t
    raise ValueError(
        f"sequence length {n} has no sublane-aligned tile <= {cap}; "
        "pad N to a multiple of 8 before calling attention_forward")


# ---------------------------------------------------------------------------
# Pass 1: K/V projection  —  kv[b, n, :] = LayerNorm(x[b, n]) @ Wkv
# ---------------------------------------------------------------------------
def _kv_project_kernel(x_ref, g_ref, wkv_ref, kv_ref):
    xn = _layernorm(x_ref[0], g_ref[0])                        # (TP, D) f32
    kv_ref[0] = jnp.dot(xn.astype(wkv_ref.dtype), wkv_ref[...],
                        preferred_element_type=jnp.float32).astype(kv_ref.dtype)


# ---------------------------------------------------------------------------
# Pass 2: flash attention over the precomputed (K | V) buffer
# ---------------------------------------------------------------------------
def _attention_kernel(xq_ref, kv_ref, g_in_ref, wq_ref, nullkv_ref, wo_ref,
                      g_out_ref, o_ref, q_scr, m_scr, l_scr, acc_scr, *,
                      heads, dim_head, exp_dtype, use_mxu_rowsum, approx_recip):
    ki = pl.program_id(2)
    cdtype = q_scr.dtype
    dh2 = 2 * dim_head
    tq = q_scr.shape[0] // heads

    # ---- first kv step of each (batch, q-tile): project Q, fold in null k/v --
    @pl.when(ki == 0)
    def _init():
        xqn = _layernorm(xq_ref[0], g_in_ref[0])               # (TQ, D) f32
        # Single lane-dense matmul; Wq is zero-padded per head to 2*Dh columns
        # (V half = 0) and pre-scaled by dim_head**-0.5 on the host.
        q_all = jnp.dot(xqn.astype(cdtype), wq_ref[...],
                        preferred_element_type=jnp.float32)    # (TQ, H*2Dh) f32
        nkv = nullkv_ref[...]                                  # (2, 2Dh) f32
        nk = nkv[0:1, :]                                       # null key   (V half 0)
        nv = nkv[1:2, :]                                       # null value (K half 0)
        for h in range(heads):                                 # 2Dh-aligned slices
            qh = q_all[:, h * dh2:(h + 1) * dh2]               # (TQ, 2Dh) f32
            q_scr[pl.ds(h * tq, tq), :] = qh.astype(cdtype)
            # null score = q . nk on the VPU/XLU (no degenerate 1-col MXU matmul)
            m_scr[pl.ds(h * tq, tq), :] = jnp.sum(qh * nk, axis=-1, keepdims=True)
        l_scr[...] = jnp.ones(l_scr.shape, l_scr.dtype)        # exp(s_null - m) == 1
        acc_scr[...] = jnp.broadcast_to(nv, acc_scr.shape)     # 1 * null value (f32)

    # ---- every kv step: one head-batched online-softmax update ---------------
    kv = kv_ref[0]                                             # (TK, 2Dh) = [K | V]
    q = q_scr[...]                                             # (H*TQ, 2Dh), V half 0
    # scores: contract over 2*Dh; q's zero V half drops the V columns of kv.
    s = lax.dot_general(q, kv, dimension_numbers=(((1,), (1,)), ((), ())),
                        preferred_element_type=jnp.float32)    # (H*TQ, TK) f32

    m_prev = m_scr[...]
    m_new = jnp.maximum(m_prev, jnp.max(s, axis=-1, keepdims=True))
    alpha = jnp.exp(m_prev - m_new)                            # f32 (EUP), tiny
    p = jnp.exp((s - m_new).astype(exp_dtype))                 # bf16 EUP on v6e/v7x
    p_c = p.astype(cdtype)

    if use_mxu_rowsum:
        # row-sum of p on the MXU (ones-column dot); XLU already does the row max.
        ones_col = jnp.ones((kv.shape[0], 1), cdtype)
        l_inc = jnp.dot(p_c, ones_col, preferred_element_type=jnp.float32)
    else:
        l_inc = jnp.sum(p.astype(jnp.float32), axis=-1, keepdims=True)
    l_scr[...] = alpha * l_scr[...] + l_inc

    # Accumulate the FULL (K|V) product; the garbage K half of acc is killed by
    # the zero rows folded into Wo, so no 64-lane slicing ever happens.
    acc_scr[...] = alpha * acc_scr[...] + jnp.dot(
        p_c, kv, preferred_element_type=jnp.float32)
    m_scr[...] = m_new

    # ---- last kv step: normalize, merge heads, output projection + LayerNorm -
    @pl.when(ki == pl.num_programs(2) - 1)
    def _finalize():
        inv_l = pl.reciprocal(l_scr[...], approx=approx_recip)   # (H*TQ, 1)
        o_scaled = acc_scr[...] * inv_l                          # (H*TQ, 2Dh) f32
        merged = jnp.concatenate(                                # (TQ, H*2Dh)
            [o_scaled[h * tq:(h + 1) * tq, :] for h in range(heads)], axis=-1)
        y = jnp.dot(merged.astype(cdtype), wo_ref[...],
                    preferred_element_type=jnp.float32)          # (TQ, D)
        o_ref[0] = _layernorm(y, g_out_ref[0]).astype(o_ref.dtype)


def attention_forward(x, params, *, heads, dim_head,
                      compute_dtype=jnp.bfloat16,
                      q_tile=512, kv_tile=512, proj_tile=512):
    """x: (B, N, D) float32. params: dict of f32 weights (see init_params).

    Default tiles (512/512) keep the working set ~25-35 MiB at real imagen sizes
    (D=512, H=8, Dh=64), which fits every generation once vmem_limit_bytes is
    raised (done automatically from pltpu.get_tpu_info()).
    """
    B, N, D = x.shape
    dh2 = 2 * dim_head
    inner2 = heads * dh2
    scale = dim_head ** -0.5
    cdt = jnp.dtype(compute_dtype)
    csize = cdt.itemsize

    tq = _pick_tile(N, q_tile)
    tk = _pick_tile(N, kv_tile)
    tp = _pick_tile(N, proj_tile)
    n_q, n_k = N // tq, N // tk

    kind = _device_kind()
    modern = _has_bf16_eup(kind)                 # v6e / v7x (and unknown)
    exp_dtype = (jnp.bfloat16
                 if (modern and cdt == jnp.dtype(jnp.bfloat16)) else jnp.float32)
    use_mxu_rowsum = modern                      # keep XLU sum on v2-v5
    approx_recip = cdt != jnp.dtype(jnp.float32)
    vmem_limit = _vmem_limit_bytes()

    # ---- host-side constant prep (folded under jit, no runtime ops) ----------
    g_in = params["gamma_in"].astype(jnp.float32)
    g_out = params["gamma_out"].astype(jnp.float32)
    wkv_c = params["wkv"].astype(compute_dtype)                       # (D, 2Dh)

    wq = params["wq"].astype(jnp.float32) * scale                     # (D, H*Dh)
    wq_pad = jnp.zeros((D, heads, dh2), jnp.float32)
    wq_pad = wq_pad.at[:, :, :dim_head].set(wq.reshape(D, heads, dim_head))
    wq_pad = wq_pad.reshape(D, inner2).astype(compute_dtype)          # (D, H*2Dh)

    wo = params["wo"].astype(jnp.float32)                             # (H*Dh, D)
    wo_pad = jnp.zeros((heads, dh2, D), jnp.float32)
    wo_pad = wo_pad.at[:, dim_head:, :].set(wo.reshape(heads, dim_head, D))
    wo_pad = wo_pad.reshape(inner2, D).astype(compute_dtype)          # (H*2Dh, D)

    nkv = params["null_kv"].astype(jnp.float32)                       # (2, Dh) f32
    null_pad = jnp.zeros((2, dh2), jnp.float32)
    null_pad = null_pad.at[0, :dim_head].set(nkv[0])                  # key -> K half
    null_pad = null_pad.at[1, dim_head:].set(nkv[1])                  # val -> V half

    # ---- pass 1: precompute K|V once per token into an HBM bf16 buffer -------
    kv_buf = pl.pallas_call(
        _kv_project_kernel,
        out_shape=jax.ShapeDtypeStruct((B, N, dh2), compute_dtype),
        grid_spec=pltpu.PrefetchScalarGridSpec(
            num_scalar_prefetch=0,
            grid=(B, N // tp),
            in_specs=[
                pl.BlockSpec((1, tp, D), lambda b, i: (b, i, 0)),     # x
                pl.BlockSpec((1, D), lambda b, i: (0, 0)),            # gamma_in
                pl.BlockSpec((D, dh2), lambda b, i: (0, 0)),          # Wkv
            ],
            out_specs=pl.BlockSpec((1, tp, dh2), lambda b, i: (b, i, 0)),
        ),
        compiler_params=pltpu.CompilerParams(
            dimension_semantics=("parallel", "parallel")),
    )(x, g_in, wkv_c)

    # ---- pass 2: flash attention ---------------------------------------------
    kernel = functools.partial(
        _attention_kernel, heads=heads, dim_head=dim_head, exp_dtype=exp_dtype,
        use_mxu_rowsum=use_mxu_rowsum, approx_recip=approx_recip)

    grid_spec = pltpu.PrefetchScalarGridSpec(
        num_scalar_prefetch=0,
        grid=(B, n_q, n_k),
        in_specs=[
            pl.BlockSpec((1, tq, D), lambda b, qi, ki: (b, qi, 0)),    # x (q rows)
            pl.BlockSpec((1, tk, dh2), lambda b, qi, ki: (b, ki, 0)),  # K|V (bf16)
            pl.BlockSpec((1, D), lambda b, qi, ki: (0, 0)),            # gamma_in
            pl.BlockSpec((D, inner2), lambda b, qi, ki: (0, 0)),       # Wq (pad+scale)
            pl.BlockSpec((2, dh2), lambda b, qi, ki: (0, 0)),          # null kv (f32)
            pl.BlockSpec((inner2, D), lambda b, qi, ki: (0, 0)),       # Wo (padded)
            pl.BlockSpec((1, D), lambda b, qi, ki: (0, 0)),            # gamma_out
        ],
        out_specs=pl.BlockSpec((1, tq, D), lambda b, qi, ki: (b, qi, 0)),
        scratch_shapes=[
            pltpu.VMEM((heads * tq, dh2), compute_dtype),   # q, head-major, V half 0
            pltpu.VMEM((heads * tq, 1), jnp.float32),       # running max m
            pltpu.VMEM((heads * tq, 1), jnp.float32),       # running denom l
            pltpu.VMEM((heads * tq, dh2), jnp.float32),     # accumulator (K|V halves)
        ],
    )

    flops = int(2 * B * N * D * inner2              # Q projection (padded)
                + 4 * B * heads * N * N * dh2       # scores + P@(K|V)
                + 2 * B * N * inner2 * D)           # output projection (padded)
    transcendentals = int(B * heads * N * (N + n_k))
    bytes_accessed = int(B * N * D * 4                      # x q rows (read once)
                         + n_q * B * N * dh2 * csize        # K|V re-streamed per q-tile
                         + B * N * D * 4                    # output
                         + (wq_pad.size + wo_pad.size) * csize)
    cost = pl.CostEstimate(flops=flops, transcendentals=transcendentals,
                           bytes_accessed=bytes_accessed)

    # B and n_q are both "parallel" so v7x's two TensorCores share B*n_q q-tiles.
    return pl.pallas_call(
        kernel,
        out_shape=jax.ShapeDtypeStruct((B, N, D), jnp.float32),
        grid_spec=grid_spec,
        compiler_params=pltpu.CompilerParams(
            dimension_semantics=("parallel", "parallel", "arbitrary"),
            vmem_limit_bytes=vmem_limit),
        cost_estimate=cost,
    )(x, kv_buf, g_in, wq_pad, null_pad, wo_pad, g_out)


def init_params(key, dim, heads, dim_head):
    inner = heads * dim_head
    k1, k2, k3, k4 = jax.random.split(key, 4)
    # Linear weights stored pre-transposed as (in, out) so kernels do x @ W.
    return {
        "gamma_in": jnp.ones((1, dim), jnp.float32),
        "wq": jax.random.normal(k1, (dim, inner), jnp.float32) * (dim ** -0.5),
        "wkv": jax.random.normal(k2, (dim, 2 * dim_head), jnp.float32) * (dim ** -0.5),
        "null_kv": jax.random.normal(k3, (2, dim_head), jnp.float32),
        "wo": jax.random.normal(k4, (inner, dim), jnp.float32) * (inner ** -0.5),
        "gamma_out": jnp.ones((1, dim), jnp.float32),
    }


def attention_reference(x, params, *, heads, dim_head):
    """Pure-JAX f32 reference mirroring the PyTorch forward (mask/attn_bias=None)."""
    scale = dim_head ** -0.5

    def ln(t, g):
        mu = jnp.mean(t, axis=-1, keepdims=True)
        var = jnp.mean((t - mu) ** 2, axis=-1, keepdims=True)
        return (t - mu) * jax.lax.rsqrt(var + EPS) * g

    b, n, d = x.shape
    xn = ln(x, params["gamma_in"][0])
    q = xn @ params["wq"]
    kv = xn @ params["wkv"]
    k, v = kv[..., :dim_head], kv[..., dim_head:]
    q = q.reshape(b, n, heads, dim_head).transpose(0, 2, 1, 3) * scale
    nk = jnp.broadcast_to(params["null_kv"][0], (b, 1, dim_head))
    nv = jnp.broadcast_to(params["null_kv"][1], (b, 1, dim_head))
    k = jnp.concatenate([nk, k], axis=1)
    v = jnp.concatenate([nv, v], axis=1)
    sim = jnp.einsum("bhid,bjd->bhij", q, k)
    attn = jax.nn.softmax(sim, axis=-1)
    out = jnp.einsum("bhij,bjd->bhid", attn, v)
    out = out.transpose(0, 2, 1, 3).reshape(b, n, heads * dim_head)
    return ln(out @ params["wo"], params["gamma_out"][0])


if __name__ == "__main__":
    B, N, DIM = 2, 16, 32
    HEADS, DIM_HEAD = 4, 16

    key = jax.random.PRNGKey(0)
    kx, kp = jax.random.split(key)
    x = jax.random.normal(kx, (B, N, DIM), jnp.float32)
    params = init_params(kp, DIM, HEADS, DIM_HEAD)

    ref = attention_reference(x, params, heads=HEADS, dim_head=DIM_HEAD)

    # Exact path (f32 MXU inputs, exact reciprocal).  Small tiles force a
    # (2, 2, 2) grid so the multi-tile online-softmax carry is exercised.
    out_f32 = jax.block_until_ready(
        attention_forward(x, params, heads=HEADS, dim_head=DIM_HEAD,
                          compute_dtype=jnp.float32,
                          q_tile=8, kv_tile=8, proj_tile=8))
    assert out_f32.shape == (B, N, DIM)
    assert jnp.allclose(out_f32, ref, atol=1e-3, rtol=1e-3), "f32 path mismatch"

    # Fast path (bf16 MXU inputs, f32 accumulation, approx reciprocal) —
    # production configuration; compare with a bf16-appropriate tolerance.
    out_bf16 = jax.block_until_ready(
        attention_forward(x, params, heads=HEADS, dim_head=DIM_HEAD,
                          compute_dtype=jnp.bfloat16,
                          q_tile=8, kv_tile=8, proj_tile=8))
    assert out_bf16.shape == (B, N, DIM)
    rel_err = float(jnp.linalg.norm(out_bf16 - ref) / jnp.linalg.norm(ref))
    assert rel_err < 5e-2, f"bf16 path relative L2 error too large: {rel_err}"

    print("KERNEL_OK")
</pallas_src>

<mosaic_0001>
module attributes {stable_mosaic.version = 11 : i64} {
  func.func @_kv_project_kernel(%arg0: i32, %arg1: i32, %arg2: memref<1x8x32xf32, #tpu.memory_space<vmem>>, %arg3: memref<1x32xf32, #tpu.memory_space<vmem>>, %arg4: memref<32x32xf32, #tpu.memory_space<vmem>>, %arg5: memref<1x8x32xf32, #tpu.memory_space<vmem>>) attributes {dimension_semantics = [#tpu.dimension_semantics<parallel>, #tpu.dimension_semantics<parallel>], iteration_bounds = array<i64: 2, 2>, scalar_prefetch = 0 : i64, scratch_operands = 0 : i64, tpu.core_type = #tpu.core_type<tc>, window_params = [{transform_indices = @transform_0, window_bounds = array<i64: 1, 8, 32>}, {pipeline_mode = #tpu.pipeline_mode<synchronous>, transform_indices = @transform_1, window_bounds = array<i64: 1, 32>}, {pipeline_mode = #tpu.pipeline_mode<synchronous>, transform_indices = @transform_2, window_bounds = array<i64: 32, 32>}, {transform_indices = @transform_3, window_bounds = array<i64: 1, 8, 32>}]} {
    %c0 = arith.constant 0 : index
    %c0_0 = arith.constant 0 : index
    %c0_1 = arith.constant 0 : index
    %0 = vector.load %arg2[%c0, %c0_0, %c0_1] : memref<1x8x32xf32, #tpu.memory_space<vmem>>, vector<1x8x32xf32>
    %1 = vector.shape_cast %0 : vector<1x8x32xf32> to vector<8x32xf32>
    %c0_2 = arith.constant 0 : index
    %c0_3 = arith.constant 0 : index
    %2 = vector.load %arg3[%c0_2, %c0_3] : memref<1x32xf32, #tpu.memory_space<vmem>>, vector<1x32xf32>
    %3 = vector.shape_cast %2 : vector<1x32xf32> to vector<32xf32>
    %cst = arith.constant dense<0.000000e+00> : vector<8xf32>
    %4 = vector.multi_reduction <add>, %1, %cst [1] : vector<8x32xf32> to vector<8xf32>
    %5 = vector.shape_cast %4 : vector<8xf32> to vector<8x1xf32>
    %cst_4 = arith.constant 3.200000e+01 : f32
    %6 = vector.broadcast %cst_4 : f32 to vector<8x1xf32>
    %7 = arith.divf %5, %6 : vector<8x1xf32>
    %8 = vector.broadcast %7 : vector<8x1xf32> to vector<8x32xf32>
    %9 = arith.subf %1, %8 : vector<8x32xf32>
    %10 = arith.mulf %9, %9 : vector<8x32xf32>
    %cst_5 = arith.constant dense<0.000000e+00> : vector<8xf32>
    %11 = vector.multi_reduction <add>, %10, %cst_5 [1] : vector<8x32xf32> to vector<8xf32>
    %12 = vector.shape_cast %11 : vector<8xf32> to vector<8x1xf32>
    %cst_6 = arith.constant 3.200000e+01 : f32
    %13 = vector.broadcast %cst_6 : f32 to vector<8x1xf32>
    %14 = arith.divf %12, %13 : vector<8x1xf32>
    %15 = vector.broadcast %7 : vector<8x1xf32> to vector<8x32xf32>
    %16 = arith.subf %1, %15 : vector<8x32xf32>
    %cst_7 = arith.constant 9.99999974E-6 : f32
    %17 = vector.broadcast %cst_7 : f32 to vector<8x1xf32>
    %18 = arith.addf %14, %17 : vector<8x1xf32>
    %19 = math.rsqrt %18 : vector<8x1xf32>
    %20 = vector.broadcast %19 : vector<8x1xf32> to vector<8x32xf32>
    %21 = arith.mulf %16, %20 : vector<8x32xf32>
    %22 = vector.shape_cast %3 : vector<32xf32> to vector<1x32xf32>
    %23 = vector.broadcast %22 : vector<1x32xf32> to vector<8x32xf32>
    %24 = arith.mulf %21, %23 : vector<8x32xf32>
    %c0_8 = arith.constant 0 : index
    %c0_9 = arith.constant 0 : index
    %25 = vector.load %arg4[%c0_8, %c0_9] : memref<32x32xf32, #tpu.memory_space<vmem>>, vector<32x32xf32>
    %cst_10 = arith.constant dense<0.000000e+00> : vector<8x32xf32>
    %26 = tpu.matmul %24, %25, %cst_10 {dimension_numbers = #tpu.dot_dimension_numbers<[1], [0], [0], [1], [0, 0, 1, 1], [], []>} : vector<8x32xf32>, vector<32x32xf32>, vector<8x32xf32> -> vector<8x32xf32>
    %c0_11 = arith.constant 0 : index
    %c0_12 = arith.constant 0 : index
    %c0_13 = arith.constant 0 : index
    %27 = vector.load %arg5[%c0_11, %c0_12, %c0_13] : memref<1x8x32xf32, #tpu.memory_space<vmem>>, vector<1x8x32xf32>
    %28 = vector.shape_cast %27 : vector<1x8x32xf32> to vector<8x32xf32>
    %29 = vector.shape_cast %26 : vector<8x32xf32> to vector<1x8x32xf32>
    tpu.vector_store %arg5[%c0_11, %c0_12, %c0_13], %29 {strides = array<i32>} : memref<1x8x32xf32, #tpu.memory_space<vmem>>, vector<1x8x32xf32>,
    return
  }
  func.func @transform_0(%arg0: i32, %arg1: i32) -> (i32, i32, i32) {
    %c0_i32 = arith.constant 0 : i32
    %c0_i32_0 = arith.constant 0 : i32
    return %arg0, %arg1, %c0_i32 : i32, i32, i32
  }
  func.func @transform_1(%arg0: i32, %arg1: i32) -> (i32, i32) {
    %c0_i32 = arith.constant 0 : i32
    %c0_i32_0 = arith.constant 0 : i32
    %c0_i32_1 = arith.constant 0 : i32
    return %c0_i32, %c0_i32_0 : i32, i32
  }
  func.func @transform_2(%arg0: i32, %arg1: i32) -> (i32, i32) {
    %c0_i32 = arith.constant 0 : i32
    %c0_i32_0 = arith.constant 0 : i32
    %c0_i32_1 = arith.constant 0 : i32
    return %c0_i32, %c0_i32_0 : i32, i32
  }
  func.func @transform_3(%arg0: i32, %arg1: i32) -> (i32, i32, i32) {
    %c0_i32 = arith.constant 0 : i32
    %c0_i32_0 = arith.constant 0 : i32
    return %arg0, %arg1, %c0_i32 : i32, i32, i32
  }
}

</mosaic_0001>

<bundles_post_ra>
// kernel: tpu_custom_call.1
= control target key start
LH: loop header
LB: loop body
LE: loop exit
PB: predicated region body
PF: predicated region fallthrough
CT: control target
= control target key end

     0   :  { %s951_s0 = inlined_call_operand.hbm [shape: f32[2,16,32], index: 0, kind: input, shape index: {}]   ;;  %s952_s1 = inlined_call_operand.vmem [shape: f32[1,32], index: 1, kind: input, shape index: {}]   ;;  %s953_s2 = inlined_call_operand.hbm [shape: f32[32,32], index: 2, kind: input, shape index: {}]   ;;  %s954_s3 = inlined_call_operand.hbm [shape: f32[2,16,32], index: 3, kind: output, shape index: {}]  }
   0x1   :  { %960 = sst [smem:[#allocation14_spill]] %s953_s2 }
   0x2   :  { %961 = sst [smem:[#allocation15_spill]] %s954_s3 }
   0x3   :  { %8 = vsyncpa [#allocation3], 0 }
   0x4   :  { %10 = vsyncpa [#allocation3 + $0x1], 0 }
   0x5   :  { %11 = vsyncpa [#allocation6], 0 }
   0x6   :  { %12 = vsyncpa [#allocation4], 0 }
   0x7   :  { %14 = vsyncpa [#allocation4 + $0x1], 0  ;;  %s745_s12 = smov 0   ;;  %s747_s13 = smov 0  }
   0x8   :  { %s749_s14 = smov 0   ;;  %s751_s15 = smov 0  }
   0x9   :  { %s753_s16 = smov 0   ;;  %s755_s17 = smov 0  }
   0xa   :  { %s757_s18 = smov 0   ;;  %s759_s19 = smov 0  }
   0xb LB: > { %962 = sst [smem:[#allocation11_spill]] %s688_s12  ;;  %s432_s20 = sadd.s32 4294967295, %s716_s19   ;;  %s716_s19 = sphi %s759_s19, %s20_s19   ;;  %s712_s18 = sphi %s757_s18, %s986_s18   ;;  %s708_s17 = sphi %s755_s17, %s985_s17   ;;  %s704_s16 = sphi %s753_s16, %s984_s16   ;;  %s700_s15 = sphi %s751_s15, %s983_s15   ;;  %s696_s14 = sphi %s749_s14, %s982_s14   ;;  %s692_s13 = sphi %s747_s13, %s981_s13   ;;  %s688_s12 = sphi %s745_s12, %s980_s12  }
   0xc   : > { %s433_s21 = sadd.s32 4294967294, %s716_s19   ;;  %p54_p0 = scmp.ne.s32.totalorder %s692_s13, %s688_s12 }
   0xd   : > { %p789_p1 = scmp.eq.s32.totalorder %s432_s20, 0  ;;  %p793_p2 = scmp.eq.s32.totalorder %s432_s20, 3 }
   0xe   : > { %p128_p3 = scmp.eq.s32.totalorder %s433_s21, 3  ;;  %p434_p5 = scmp.ge.s32.totalorder %s716_s19, 1 }
   0xf   : > { %p799_p4 = por %p789_p1, %p54_p0  ;;  %p135_p7 = scmp.lt.s32.totalorder %s716_s19, 5 }
  0x10   : > { %p804_p6 = por %p128_p3, %p54_p0  ;;  %s718_s27 = smov [#allocation5]  }
  0x11   : > { %s965_s24 = scalar_select %p799_p4, 1, 0 }
  0x12   : > { %s966_s25 = scalar_select %p804_p6, 1, 0 }
  0x13   : > { %p809_p8 = pnand %p434_p5, %p135_p7  ;;  %s150_s28 = sshll.u32 %s718_s27, 4  ;;  %s151_s28 = int_to_ptr.vmem [resolvable:$true] %s150_s28 }
  0x14   : > { %967 = sst [smem:[#allocation12_spill]] %s966_s25  ;;  %s573_s29 = scalar_lea.vmem %s151_s28, 512 }
  0x15   : > { %p475_p9 = pneg %p809_p8  ;;  %p574_p12 = scmp.ne.s32.totalorder %s151_s28, %s573_s29 }
  0x16   : > { %p581_p3 = scmp.lt.s32.totalorder %s151_s28, %s151_s28  ;;  %p582_p6 = scmp.lt.s32.totalorder %s573_s29, %s573_s29 }
  0x17   : > { %p476_p10 = pnand %p475_p9, %p789_p1 }
  0x18   : > { %p583_p4 = por %p582_p6, %p581_p3 }
  0x19   : > { %p564_p11 = pneg %p476_p10 }
  0x1b   : > { %p576_p13 = pnand %p574_p12, %p564_p11 }
  0x1d   : > { %p577_p0 = pneg %p576_p13 }
  0x1f   : > { %p584_p5 = pnand %p583_p4, %p577_p0 }
  0x21   : > { %587 = shalt.err (!%p584_p5)
}
  0x22   : > { %s719_s30 = smov 128   ;;  %s720_s4 = smov 8  }
  0x23   : > { %s969_s2 = sld [smem:[#allocation14_spill]]  ;;  %s29_s7 = sadd.s32 1, %s708_s17 }
  0x24   : > { %p30_p4 = scmp.ge.s32.totalorder %s29_s7, 2  ;;  %s32_s8 = sadd.s32 1, %s712_s18 }
  0x25   : > { %s41_s9 = sadd.s32 1, %s696_s14  ;;  %p48_p6 = scmp.ne.s32.totalorder %s696_s14, %s692_s13 }
  0x26   : > { %s988_s7 = smov (%p30_p4, %s29_s7), 0  ;;  %s990_s8 = smov (!%p30_p4, %s32_s8), %s712_s18 }
  0x27   : > { %970 = sst [smem:[#allocation13_spill]] %s988_s7  ;;  %s37_s10 = ssub.s32 %s708_s17, %s988_s7 }
  0x28   : > { %p49_p7 = scmp.eq.s32.totalorder %s716_s19, 0  ;;  %p34_p9 = scmp.ge.s32.totalorder %s990_s8, 2 }
  0x29   : > { %478 = dma.hbm_to_vmem [thread:$0]  (!%p476_p10), %s969_s2, 512, %s151_s28, [#allocation6], %s719_s30, %s719_s30, %s720_s4  }
  0x2a   : > { %p833_p11 = por %p793_p2, %p48_p6  ;;  %p837_p10 = por %p49_p7, %p48_p6 }
  0x2b   : > { %p488_p12 = scmp.lt.s32.totalorder %s716_s19, 4  ;;  %s992_s8 = smov (%p34_p9, %s990_s8), 0 }
  0x2c   : > { %s164_s21 = sand.u32 1, %s696_s14   ;;  %s438_s27 = sshll.u32 %s712_s18, 1 }
  0x2d   : > { %s36_s28 = ssub.s32 %s712_s18, %s992_s8  ;;  %s437_s30 = sshll.u32 %s164_s21, 3 }
  0x2e   : > { %s38_s29 = sor.u32 %s37_s10, %s36_s28  ;;  %s173_s23 = sadd.s32 %s708_s17, %s438_s27 }
  0x2f   : > { %p39_p13 = scmp.eq.s32.totalorder %s38_s29, 0  ;;  %s168_s4 = scalar_lea.vmem [#allocation2], %s437_s30 }
  0x30   : > { %s177_s5 = sshll.u32 %s168_s4, 4  ;;  %s439_s2 = sshll.u32 %s173_s23, 7  ;;  %s178_s5 = int_to_ptr.vmem [resolvable:$true] %s177_s5 }
  0x31   : > { %s850_s6 = scalar_select %p39_p13, %s696_s14, %s41_s9  }
  0x32   : > { %s175_s12 = scalar_lea.hbm %s951_s0, %s439_s2  ;;  %p859_p2 = pnand %p488_p12, %p837_p10 }
  0x33   : > { %s165_s10 = scalar_lea.sflag [#allocation3], %s164_s21  ;;  %s601_s27 = scalar_lea.vmem %s178_s5, 128 }
  0x34   : > { %p590_p0 = pneg %p859_p2  ;;  %p602_p3 = scmp.ne.s32.totalorder %s178_s5, %s601_s27 }
  0x35   : > { %s721_s9 = smov [#allocation2]  }
  0x36   : > { %p604_p5 = pnand %p602_p3, %p590_p0  ;;  %s606_s28 = sshll.u32 %s721_s9, 4  ;;  %s607_s28 = int_to_ptr.vmem [resolvable:$false] %s606_s28 }
  0x37   : > { %s608_s29 = scalar_lea.vmem %s607_s28, 256  ;;  %p609_p6 = scmp.lt.s32.totalorder %s178_s5, %s607_s28 }
  0x38   : > { %p605_p4 = pneg %p604_p5  ;;  %p610_p7 = scmp.lt.s32.totalorder %s608_s29, %s601_s27 }
  0x3a   : > { %p611_p9 = por %p610_p7, %p609_p6 }
  0x3c   : > { %p612_p13 = pnand %p611_p9, %p605_p4 }
  0x3e   : > { %615 = shalt.err (!%p612_p13)
}
  0x3f   : > { %482 = dma.hbm_to_vmem [thread:$0]  (!%p859_p2), %s175_s12, 128, %s178_s5, %s165_s10  }
  0x40   : > { %186 = sbr.rel (%p809_p8) target bundleno = 586 (0x24a), region = 32  ;;  %s870_s2 = sand.u32 (!%p809_p8), 1, %s692_s13  }
  0x41   : > { %s441_s25 = sshll.u32 (!%p809_p8), %s870_s2, 3  ;;  %s189_s7 = scalar_lea.sflag (!%p809_p8), [#allocation3], %s870_s2 }
  0x42   : > { %s192_s20 = scalar_lea.vmem (!%p809_p8), [#allocation2], %s441_s25  ;;  %p974_p10 = scmp.ne.s32.totalorder (!%p809_p8), %s965_s24, 0 }
  0x45   : > { %675 = dma.done.wait (%p974_p10), %s189_s7, 128  }
  0x46   : > { %677 = vsyncadd (%p974_p10), %s189_s7, 4294967168 }
  0x47   : > { %679 = dma.done.wait (%p789_p1), [#allocation6], 512  }
  0x48   : > { %681 = vsyncadd (%p789_p1), [#allocation6], 4294966784  ;;  %vm221_vm0 = vcmask 261120   ;;  %v219_v0 = vld [vmem:[%s192_s20] sm:$0xff]  ;;  %v722_v8 = vmov 0.0   ;;  %vm723_vm1 = vmmov 0  }
  0x49   : > { %v222_v1 = vsel %vm221_vm0, %v219_v0, 0.0  ;;  %v246_v7 = vld [vmem:[#allocation5 + $0x18] sm:$0xff]  ;;  %456 = vmatprep.subr.mxu0 %v722_v8  ;;  %v245_v9 = vld [vmem:[#allocation5 + $0x10] sm:$0xff]  ;;  %464 = vmatprep.mubr.msk.f32.mxu0 %vm723_vm1, %v722_v8  ;;  %v244_v10 = vld [vmem:[#allocation5 + $0x8] sm:$0xff]  ;;  %s447_s22 = sshll.u32 %s704_s16, 1  ;;  %s218_s21 = scalar_lea.vmem [#allocation7], %s441_s25 }
  0x4a   : > { %223 = vadd.xlane.f32.xlu0 %v222_v1  ;;  %457 = vmatpush3.msra.mxu0 %v246_v7  ;;  %v243_v11 = vld [vmem:[#allocation5] sm:$0xff]  ;;  %v444_v16 = vld [vmem:[%s952_s1] ss:$0 sm:$0xff]  ;;  %s333_s24 = sadd.s32 %s700_s15, %s447_s22  ;;  %s337_s30 = sshll.u32 %s218_s21, 4  ;;  %s899_s30 = int_to_ptr.vmem [resolvable:$true] %s337_s30 }
  0x4b   : > { %458 = vmatprep.subr.mxu0 %v722_v8  ;;  %s448_s26 = sshll.u32 %s333_s24, 7  ;;  %s975_s5 = sld [smem:[#allocation15_spill]] }
  0x4c   : > { %459 = vmatpush3.msra.mxu0 %v245_v9  ;;  %s322_s16 = scalar_lea.sflag [#allocation4], %s870_s2  ;;  %s616_s15 = scalar_lea.vmem %s899_s30, 128 }
  0x4d   : > { %460 = vmatprep.subr.mxu0 %v722_v8  ;;  %p617_p1 = scmp.ne.s32.totalorder %s899_s30, %s616_s15  ;;  %s724_s27 = smov [#allocation7]  }
  0x4e   : > { %461 = vmatpush3.msra.mxu0 %v244_v10  ;;  %s620_s9 = sshll.u32 %s724_s27, 4  ;;  %s621_s9 = int_to_ptr.vmem [resolvable:$false] %s620_s9 }
  0x4f   : > { %462 = vmatprep.subr.mxu0 %v722_v8  ;;  %p618_p8 = pnand %p617_p1, %p833_p11  ;;  %s622_s28 = scalar_lea.vmem %s621_s9, 256 }
  0x50   : > { %463 = vmatpush3.msra.mxu0 %v243_v11  ;;  %p623_p2 = scmp.lt.s32.totalorder %s899_s30, %s621_s9  ;;  %p624_p0 = scmp.lt.s32.totalorder %s622_s28, %s616_s15 }
  0x51   : > { %s897_s10 = scalar_lea.hbm %s975_s5, %s448_s26  ;;  %p619_p12 = pneg %p618_p8 }
  0x52   : > { %p625_p3 = por %p624_p0, %p623_p2 }
  0x54   : > { %p626_p5 = pnand %p625_p3, %p619_p12 }
  0xd3   : > { %v224_v2 = vpop.xlane.xlu0 %223 }
  0xd4   : > { %v226_v3 = vmul.f32 0.03125, %v224_v2 }
  0xd6   : > { %v227_v4 = vsub.f32 %v219_v0, %v226_v3 }
  0xd8   : > { %v228_v5 = vmul.f32 %v227_v4, %v227_v4 }
  0xda   : > { %v229_v6 = vsel %vm221_vm0, %v228_v5, 0.0 }
  0xdb   : > { %230 = vadd.xlane.f32.xlu0 %v229_v6 }
 0x164   : > { %v231_v12 = vpop.xlane.xlu0 %230 }
 0x165   : > { %v232_v13 = vmul.f32 0.03125, %v231_v12 }
 0x167   : > { %v233_v14 = vadd.f32 1e-05, %v232_v13 }
 0x169   : > { %560 = vrsqrt.f32 %v233_v14 }
 0x176   : > { %v561_v15 = vpop.eup %560 }
 0x177   : > { %v235_v17 = vmul.f32 %v561_v15, %v227_v4 }
 0x179   : > { %v242_v18 = vmul.f32 %v444_v16, %v235_v17 }
 0x17b   : > { %465 = vmatmul.mubr.msk.f32.vlgmr.msra.gmra.mxu0 %vm221_vm0, %v242_v18 }
 0x23b   : > { %v316_v19 = vpop.f32.mrf.mxu0 }
 0x23c   : > { %320 = vst.msk [vmem:[%s218_s21] sm:$0xff] %vm221_vm0, %v316_v19 }
 0x23d   : > { %v466_v20 = vpop.f32.mrf.mxu0 }
 0x23e   : > { %629 = shalt.err (!%p626_p5)
}
 0x23f   : > { %s630_s29 = scalar_lea.hbm %s897_s10, 128  ;;  %s634_s7 = scalar_lea.hbm %s975_s5, 512 }
 0x240   : > { %p631_p4 = scmp.ne.s32.totalorder %s897_s10, %s630_s29  ;;  %p635_p9 = scmp.lt.s32.totalorder %s897_s10, %s975_s5 }
 0x241   : > { %p636_p13 = scmp.lt.s32.totalorder %s634_s7, %s630_s29 }
 0x242   : > { %p632_p6 = pnand %p631_p4, %p833_p11 }
 0x243   : > { %p637_p10 = por %p636_p13, %p635_p9 }
 0x244   : > { %p633_p7 = pneg %p632_p6 }
 0x246   : > { %p638_p1 = pnand %p637_p10, %p633_p7 }
 0x248   : > { %641 = shalt.err (!%p638_p1)
}
 0x249   : > { %473 = dma.vmem_to_hbm [thread:$0]  (%p833_p11), %s899_s30, 128, %s897_s10, %s322_s16  }
 0x24a PF: > { %s976_s12 = sld [smem:[#allocation11_spill]]  ;;  %p490_p8 = scmp.ge.s32.totalorder %s716_s19, 2 }
 0x24b   : > { %s977_s22 = sld [smem:[#allocation12_spill]] }
 0x250   : > { %s349_s24 = sand.u32 1, %s976_s12  }
 0x251   : > { %p978_p12 = scmp.ne.s32.totalorder %s977_s22, 0  ;;  %s350_s26 = scalar_lea.sflag [#allocation4], %s349_s24 }
 0x253   : > { %p484_p2 = pnand %p490_p8, %p978_p12 }
 0x255   : > { %p485_p0 = pneg %p484_p2 }
 0x257   : > { %683 = dma.done.wait (%p485_p0), %s350_s26, 128  }
 0x258   : > { %685 = vsyncadd (%p485_p0), %s350_s26, 4294967168  ;;  %s20_s19 = sadd.s32 1, %s716_s19   ;;  %s979_s11 = sld [smem:[#allocation13_spill]] }
 0x259   : > { %p17_p3 = scmp.ge.s32.totalorder %s20_s19, 6   ;;  %s980_s12 = smov %s692_s13 }
 0x25a   : > { %s981_s13 = smov %s696_s14  ;;  %s982_s14 = smov %s850_s6 }
 0x25b   : > { %s983_s15 = smov %s708_s17  ;;  %s984_s16 = smov %s712_s18 }
 0x25c   : > { %s986_s18 = smov %s992_s8  ;;  %19 = sbr.rel (!%p17_p3) target bundleno = 11 (0xb), region = 81 }
 0x25e   : > { %s985_s17 = smov %s979_s11 }
 0x261   :  { %355 = vsyncpa [#allocation3], 1 }
 0x262   :  { %357 = vsyncpa [#allocation3 + $0x1], 1 }
 0x263   :  { %358 = vsyncpa [#allocation6], 1 }
 0x264   :  { %359 = vsyncpa [#allocation4], 1 }
 0x265   :  { %361 = vsyncpa [#allocation4 + $0x1], 1 }

</bundles_post_ra>
